<compile_context>
chip_gen: v7x
topology: tpu7x:2x2x1
jax: 0.10.0
libtpu: 0.0.40
codegen_flags: <defaults>
</compile_context>

<pallas_src>
import functools

import numpy as np
import jax
import jax.numpy as jnp
from jax.experimental import pallas as pl
from jax.experimental.pallas import tpu as pltpu


# ----------------------------------------------------------------------------
# small helpers
# ----------------------------------------------------------------------------
def _round_up(x, m):
    return ((x + m - 1) // m) * m


def _pad8(x):
    return _round_up(max(int(x), 1), 8)


def _pad_cols(A, d_pad):
    n, d = A.shape
    if d_pad == d:
        return A
    return jnp.pad(A, ((0, 0), (0, d_pad - d)))


@functools.lru_cache(maxsize=None)
def _vmem_budget():
    """0.75 * per-core VMEM: ~48 MiB on v7x, ~96 MiB on 128 MiB parts."""
    try:
        cap = int(pltpu.get_tpu_info().vmem_capacity_bytes)
    except Exception:
        cap = 128 * 1024 * 1024
    return max(16 * 1024 * 1024, int(0.75 * cap))


def _vmem_limit(need_bytes):
    return int(min(_vmem_budget(), max(8 * 1024 * 1024, 2 * int(need_bytes))))


def _colnorm_need_bytes(n, gkp, g, td):
    # double-buffered blocks (q, a, colsq, out) + in-kernel intermediates, f32
    return 4 * (2 * gkp * n + 2 * n * td + 2 * td + 2 * g * td + 2 * gkp * td)


@functools.lru_cache(maxsize=None)
def _pick_td(d_pad, n, gkp):
    """Largest column tile that fits the per-generation VMEM budget; prefer
    >= 2 tiles so both v7x TensorCores get work."""
    budget = _vmem_budget()
    opts = [t for t in (1024, 512, 256, 128) if t <= d_pad and d_pad % t == 0]
    if not opts:
        opts = [d_pad]
    multi = [t for t in opts if d_pad // t >= 2]
    if multi:
        opts = multi
    for td in opts:                      # descending
        if _colnorm_need_bytes(n, gkp, max(gkp // 8, 1), td) <= budget:
            return td
    return opts[-1]


def _pick_td_basic(d_pad):
    for td in (512, 256, 128):
        if d_pad % td == 0:
            return td
    return d_pad


def _pick_group(c, kp):
    """Candidates per grid step: fill >=128 MXU rows; keep block dims legal
    (either a multiple of 8 or equal to the full candidate extent)."""
    g = max(8, 128 // kp)
    if c <= g:
        return max(int(c), 1)
    return g


# ----------------------------------------------------------------------------
# Pallas kernels
# ----------------------------------------------------------------------------
def _colnorm_kernel(q_ref, a_ref, colsq_ref, cn_ref, *, g, kp):
    """cn[c, j] = ||a_j||^2 - ||Q_c^T a_j||^2 for g stacked candidates.

    q_ref     : (g*kp, n)  f32   stacked, zero-padded Q^T factors
    a_ref     : (n, td)    f32   column tile of A
    colsq_ref : (1, td)    f32   precomputed ||a_j||^2
    cn_ref    : (g, td)    f32
    """
    qa = jnp.dot(q_ref[...], a_ref[...],
                 preferred_element_type=jnp.float32)          # (g*kp, td)
    qa2 = qa * qa
    if g == 1:
        proj = jnp.sum(qa2, axis=0, keepdims=True)            # (1, td)
    else:
        td = qa2.shape[-1]
        proj = jnp.sum(qa2.reshape(g, kp, td), axis=1)        # (g, td)
    cn_ref[...] = jnp.maximum(colsq_ref[...] - proj, 0.0)


def _gumbel_softmax_kernel(cn_ref, u_ref, s_ref, *, d_valid, inv_temp):
    """softmax((log(cn+eps) - log(total+eps) + gumbel(u)) / T) over valid lanes."""
    cn = cn_ref[...]                                          # (1, d_pad)
    u = u_ref[...]                                            # (1, d_pad)
    lane = jax.lax.broadcasted_iota(jnp.int32, cn.shape, 1)
    valid = lane < d_valid
    total = jnp.sum(jnp.where(valid, cn, 0.0), axis=1, keepdims=True)
    gumbel = -jnp.log(-jnp.log(u + 1e-10) + 1e-10)
    logits = (jnp.log(cn + 1e-10) - jnp.log(total + 1e-10) + gumbel) * inv_temp
    logits = jnp.where(valid, logits, -1e30)
    m = jnp.max(logits, axis=-1, keepdims=True)
    ex = jnp.exp(logits - m)
    s_ref[...] = ex / jnp.sum(ex, axis=-1, keepdims=True)


def _soft_proj_kernel(a_full_ref, s_ref, a_tile_ref, e_ref):
    """E_tile = A_tile - (A*s) @ ((A*s)^T @ A_tile).  Dead code in the
    reference (result never used); kept behind a flag only for parity."""
    a_i = (a_full_ref[...] * s_ref[...]).astype(jnp.bfloat16)            # (n, d_pad)
    at = a_tile_ref[...]                                                 # (n, td) f32
    g = jax.lax.dot_general(a_i, at.astype(jnp.bfloat16),
                            (((0,), (0,)), ((), ())),
                            preferred_element_type=jnp.float32)          # (d_pad, td)
    e_ref[...] = at - jnp.dot(a_i, g.astype(jnp.bfloat16),
                              preferred_element_type=jnp.float32)


# ----------------------------------------------------------------------------
# pallas_call wrappers (cached per static shape)
# ----------------------------------------------------------------------------
@functools.lru_cache(maxsize=None)
def _colnorm_call(c_pad, g, kp, n, d_pad, td):
    """Stacked residual-column-norm kernel: grid = (d tiles, candidate groups).

    Inputs:  q_stack (c_pad*kp, n) f32, A_pad (n, d_pad) f32, colsq (1, d_pad) f32
    Output:  cn (c_pad, d_pad) f32
    """
    n_tiles = d_pad // td
    n_groups = c_pad // g
    gkp = g * kp
    need = _colnorm_need_bytes(n, gkp, g, td)
    kernel = functools.partial(_colnorm_kernel, g=g, kp=kp)
    return pl.pallas_call(
        kernel,
        out_shape=jax.ShapeDtypeStruct((c_pad, d_pad), jnp.float32),
        grid=(n_tiles, n_groups),
        in_specs=[pl.BlockSpec((gkp, n), lambda j, ci: (ci, 0)),
                  pl.BlockSpec((n, td), lambda j, ci: (0, j)),
                  pl.BlockSpec((1, td), lambda j, ci: (0, j))],
        out_specs=pl.BlockSpec((g, td), lambda j, ci: (ci, j)),
        compiler_params=pltpu.CompilerParams(
            dimension_semantics=("parallel", "parallel"),
            vmem_limit_bytes=_vmem_limit(need)),
    )


@functools.lru_cache(maxsize=None)
def _gumbel_softmax_call(d_pad, d_valid, inv_temp):
    kernel = functools.partial(_gumbel_softmax_kernel,
                               d_valid=d_valid, inv_temp=inv_temp)
    need = 4 * 8 * d_pad
    return pl.pallas_call(
        kernel,
        out_shape=jax.ShapeDtypeStruct((1, d_pad), jnp.float32),
        grid=(1,),
        in_specs=[pl.BlockSpec((1, d_pad), lambda i: (0, 0)),
                  pl.BlockSpec((1, d_pad), lambda i: (0, 0))],
        out_specs=pl.BlockSpec((1, d_pad), lambda i: (0, 0)),
        compiler_params=pltpu.CompilerParams(
            dimension_semantics=("arbitrary",),
            vmem_limit_bytes=_vmem_limit(need)),
    )


@functools.lru_cache(maxsize=None)
def _soft_proj_call(n, d_pad, td):
    n_tiles = d_pad // td
    need = 4 * (2 * n * d_pad + 2 * d_pad + 4 * n * td + d_pad * td)
    return pl.pallas_call(
        _soft_proj_kernel,
        out_shape=jax.ShapeDtypeStruct((n, d_pad), jnp.float32),
        grid=(n_tiles,),
        in_specs=[pl.BlockSpec((n, d_pad), lambda j: (0, 0)),
                  pl.BlockSpec((1, d_pad), lambda j: (0, 0)),
                  pl.BlockSpec((n, td), lambda j: (0, j))],
        out_specs=pl.BlockSpec((n, td), lambda j: (0, j)),
        compiler_params=pltpu.CompilerParams(
            dimension_semantics=("parallel",),
            vmem_limit_bytes=_vmem_limit(need)),
    )


@functools.lru_cache(maxsize=None)
def _inner_step_fn(n, kp, d_pad, d, td, inv_temp):
    """One fused, jitted inner step: column norms -> gumbel softmax -> I_soft."""
    cn_call = _colnorm_call(1, 1, kp, n, d_pad, td)
    gs_call = _gumbel_softmax_call(d_pad, d, inv_temp)

    @jax.jit
    def step(q_pad, a_pad, colsq, i_soft, u):
        cn = cn_call(q_pad, a_pad, colsq)              # (1, d_pad)
        soft = gs_call(cn, u)                          # (1, d_pad)
        new_i = i_soft + soft * (1.0 - i_soft)
        return new_i, cn, soft

    return step


# ----------------------------------------------------------------------------
# Glue helpers
# ----------------------------------------------------------------------------
def _orth_factor(A, sel, n):
    """Zero-padded Q^T (kp, n) from a reduced QR of the selected columns."""
    # TODO(synk): QR (like pinverse/SVD) has no Pallas equivalent; jnp.linalg.qr is used.
    ks = int(len(sel))
    kp = _pad8(ks)
    if ks == 0:
        return jnp.zeros((kp, n), jnp.float32)
    cols = A[:, np.asarray(sel, np.int64)]
    q, _ = jnp.linalg.qr(cols)                          # (n, min(n, ks))
    r = int(q.shape[1])
    qt = jnp.swapaxes(q, 0, 1)
    return jnp.pad(qt, ((0, kp - r), (0, 0)))


# ----------------------------------------------------------------------------
# ContinuousLS (inner refinement) — mirrors the PyTorch module
# ----------------------------------------------------------------------------
class ContinuousLS:
    def __init__(self, temperature=1.0):
        self.temperature = temperature

    def __call__(self, A_prime, k, S, key, A_host=None, A_pad=None, colsq=None):
        n, d = A_prime.shape
        d_pad = _round_up(d, 128)
        if A_host is None:
            A_host = np.asarray(A_prime)
        if A_pad is None:
            A_pad = _pad_cols(A_prime, d_pad)
        if colsq is None:
            colsq = jnp.sum(A_pad * A_pad, axis=0, keepdims=True)

        # --- residual col norms:  cn_j = ||a_j||^2 - ||Q_S^T a_j||^2 ---
        ks = int(S.shape[1])
        kp = _pad8(ks)
        if ks > 0:
            q, _ = jnp.linalg.qr(S)
            r = int(q.shape[1])
            q_pad = jnp.pad(jnp.swapaxes(q, 0, 1), ((0, kp - r), (0, 0)))
        else:
            q_pad = jnp.zeros((kp, n), jnp.float32)
        td = _pick_td(d_pad, n, kp)
        cn = _colnorm_call(1, 1, kp, n, d_pad, td)(q_pad, A_pad, colsq)
        col_norms = np.asarray(cn)[0, :d]                 # single sync
        probs = col_norms / (col_norms.sum() + 1e-10)

        num_samples = min(10 * k, d)
        key, sub = jax.random.split(key)
        u = np.asarray(jax.random.uniform(sub, (d,), jnp.float32))
        gumbel = -np.log(-np.log(u + 1e-10) + 1e-10)
        logits = np.log(probs + 1e-10) + gumbel
        C_indices = np.argsort(-logits)[:num_samples]

        # --- membership test (vectorized on host) ---
        I_soft = np.zeros(d, np.float32)
        if ks > 0:
            S_norms = np.asarray(jnp.sqrt(jnp.sum(S * S, axis=0)))
            colA = np.sqrt(np.sum(A_host * A_host, axis=0))
            rel = np.abs(S_norms[None, :] - colA[:, None]) / (colA[:, None] + 1e-10)
            I_soft = (rel < 1e-5).any(axis=1).astype(np.float32)

        # --- batched candidate sweep: vmapped QR + one stacked pallas_call ---
        base_sel = np.where(I_soft > 0.5)[0]
        sel_lists, q_for_cand = [], []
        for p_idx in C_indices:
            temp = I_soft.copy()
            temp[p_idx] = 1.0
            for q_idx in base_sel:
                tq = temp.copy()
                tq[q_idx] = 0.0
                sel = np.where(tq > 0.5)[0]
                if sel.size > 0:
                    sel_lists.append(sel)
                    q_for_cand.append(int(q_idx))

        min_idx = -1
        if sel_lists:
            C = len(sel_lists)
            kpc = _pad8(max(len(s) for s in sel_lists))
            cols_np = np.zeros((C, n, kpc), np.float32)
            lens = np.zeros((C,), np.int32)
            for ci, sl in enumerate(sel_lists):
                cols_np[ci, :, : len(sl)] = A_host[:, sl]
                lens[ci] = len(sl)
            cols_b = jnp.asarray(cols_np)
            q_b, _ = jax.vmap(jnp.linalg.qr)(cols_b)                 # (C, n, qcols)
            qcols = int(q_b.shape[2])
            # Householder QR: Q[:, :len] depends only on the real (leading) columns,
            # so masking the padded slots reproduces the pinv projection exactly.
            mask = (jnp.arange(qcols)[None, :]
                    < jnp.asarray(lens)[:, None]).astype(jnp.float32)
            q_b = q_b * mask[:, None, :]
            qt_b = jnp.swapaxes(q_b, 1, 2)                           # (C, qcols, n)
            if qcols < kpc:
                qt_b = jnp.pad(qt_b, ((0, 0), (0, kpc - qcols), (0, 0)))
            g = _pick_group(C, kpc)
            c_pad = _round_up(C, g)
            q_stack = qt_b.reshape(C * kpc, n)
            if c_pad > C:
                q_stack = jnp.pad(q_stack, ((0, (c_pad - C) * kpc), (0, 0)))
            td_b = _pick_td(d_pad, n, g * kpc)
            cn_b = _colnorm_call(c_pad, g, kpc, n, d_pad, td_b)(q_stack, A_pad, colsq)
            obj = np.asarray(jnp.sum(cn_b[:C], axis=1))   # ||A - P_c A||_F^2, one sync
            min_idx = q_for_cand[int(np.argmin(obj))]

        if min_idx != -1:
            I_soft[min_idx] = 0.0
            num_eff = len(C_indices)
            p_soft = jax.nn.softmax(jnp.ones((num_eff,), jnp.float32)
                                    / self.temperature)
            key, sub = jax.random.split(key)
            pick = int(jax.random.choice(sub, num_eff, p=p_soft))
            I_soft[int(C_indices[pick])] = 1.0

        selected = np.where(I_soft > 0.5)[0]
        return A_prime[:, selected], key


# ----------------------------------------------------------------------------
# ContinuousLSCSS — top-level forward
# ----------------------------------------------------------------------------
class ContinuousLSCSS:
    def __init__(self, temperature=1.0, compute_dead_proj_update=False):
        self.temperature = temperature
        # The proj_update matmul in the reference is dead code (result unused);
        # gated off by default per the perf review.
        self.compute_dead_proj_update = compute_dead_proj_update

    def __call__(self, A, k, T, key):
        A = jnp.asarray(A, jnp.float32)
        n, d = A.shape
        d_pad = _round_up(d, 128)

        A_pad = _pad_cols(A, d_pad)
        colsq = jnp.sum(A_pad * A_pad, axis=0, keepdims=True)       # (1, d_pad)
        B = A
        D = None
        I_soft = jnp.zeros((1, d_pad), jnp.float32)
        I_soft_host = np.zeros(d, np.float32)
        inv_temp = 1.0 / self.temperature

        for t in range(T):
            cn_last = None
            for _ in range(k):
                sel = np.where(I_soft_host > 0.5)[0]
                q_pad = _orth_factor(A, sel, n)                      # (kp, n)
                kp = int(q_pad.shape[0])
                td = _pick_td(d_pad, n, kp)
                step = _inner_step_fn(n, kp, d_pad, d, td, inv_temp)
                key, sub = jax.random.split(key)
                u = jax.random.uniform(sub, (1, d_pad), jnp.float32)
                I_soft, cn_last, soft = step(q_pad, A_pad, colsq, I_soft, u)
                # TODO(synk): one device->host sync per inner step is inherent to the
                # reference's data-dependent column selection (ks changes per step).
                I_soft_host = np.asarray(I_soft)[0, :d]
                if self.compute_dead_proj_update:
                    _ = _soft_proj_call(n, d_pad, _pick_td_basic(d_pad))(
                        A_pad, soft, A_pad)
            if t == 0:
                # Reuse the last inner step's column norms (same A_I, same A).
                norm_factor = float(jnp.sqrt(jnp.sum(cn_last)))
                diag_values = norm_factor / ((52 * min(n, d) * (k + 1)) ** 1.5 + 1e-10)
                D = diag_values * jnp.eye(n, d, dtype=jnp.float32)
                A = A + D
                A_pad = _pad_cols(A, d_pad)
                colsq = jnp.sum(A_pad * A_pad, axis=0, keepdims=True)
                I_soft = jnp.zeros((1, d_pad), jnp.float32)
                I_soft_host = np.zeros(d, np.float32)

        A_prime = B + D if D is not None else B
        A_prime_pad = _pad_cols(A_prime, d_pad)
        A_prime_host = np.asarray(A_prime)
        colsq_prime = jnp.sum(A_prime_pad * A_prime_pad, axis=0, keepdims=True)
        S = A_prime[:, np.where(I_soft_host > 0.5)[0]]
        continuous_ls = ContinuousLS(temperature=self.temperature)
        for _ in range(T):
            S, key = continuous_ls(A_prime, k, S, key,
                                   A_host=A_prime_host, A_pad=A_prime_pad,
                                   colsq=colsq_prime)

        I_final = np.where(I_soft_host > 0.5)[0][:k]
        if len(I_final) < k:
            remaining = np.argsort(-I_soft_host)
            remaining = remaining[~np.isin(remaining, I_final)]
            I_final = np.concatenate([I_final, remaining[: k - len(I_final)]])
        I_final = I_final[:k].astype(np.int32)
        return A_prime[:, I_final], jnp.asarray(I_final)


# ----------------------------------------------------------------------------
if __name__ == "__main__":
    key = jax.random.PRNGKey(0)
    key, sub = jax.random.split(key)

    n, d, k, T = 16, 32, 2, 2
    A = jax.random.normal(sub, (n, d), jnp.float32)

    model = ContinuousLSCSS(temperature=1.0)
    A_selected, I_final = model(A, k, T, key)
    jax.block_until_ready(A_selected)
    jax.block_until_ready(I_final)
    assert A_selected.shape == (n, k), A_selected.shape
    assert I_final.shape == (k,), I_final.shape

    # --- validate the stacked (grouped) residual-norm kernel against a JAX ref ---
    d_pad = _round_up(d, 128)
    A_pad = _pad_cols(A, d_pad)
    colsq = jnp.sum(A_pad * A_pad, axis=0, keepdims=True)
    C, ks = 20, 3
    kpc = _pad8(ks)
    key, sub = jax.random.split(key)
    cols_b = jax.random.normal(sub, (C, n, ks), jnp.float32)
    q_b, _ = jax.vmap(jnp.linalg.qr)(cols_b)
    qt_b = jnp.pad(jnp.swapaxes(q_b, 1, 2), ((0, 0), (0, kpc - ks), (0, 0)))
    g = _pick_group(C, kpc)
    c_pad = _round_up(C, g)
    q_stack = qt_b.reshape(C * kpc, n)
    if c_pad > C:
        q_stack = jnp.pad(q_stack, ((0, (c_pad - C) * kpc), (0, 0)))
    td = _pick_td(d_pad, n, g * kpc)
    cn_b = _colnorm_call(c_pad, g, kpc, n, d_pad, td)(q_stack, A_pad, colsq)
    proj = jnp.einsum("ckn,nd->ckd", qt_b, A_pad)
    cn_ref = jnp.maximum(colsq - jnp.sum(proj * proj, axis=1), 0.0)
    err = float(jnp.max(jnp.abs(cn_b[:C] - cn_ref)))
    assert err < 1e-3 * (1.0 + float(jnp.max(colsq))), err

    # Exercise the gated-off (dead-code) soft-projection kernel once so the
    # optional path stays verified; it never runs in the forward by default.
    key, sub = jax.random.split(key)
    s_test = jax.nn.softmax(jax.random.normal(sub, (1, d_pad), jnp.float32), axis=-1)
    e_test = _soft_proj_call(n, d_pad, _pick_td_basic(d_pad))(A_pad, s_test, A_pad)
    jax.block_until_ready(e_test)
    assert e_test.shape == (n, d_pad), e_test.shape

    print("KERNEL_OK")
</pallas_src>

<mosaic_0001>
module attributes {stable_mosaic.version = 11 : i64} {
  func.func @_gumbel_softmax_kernel(%arg0: i32, %arg1: memref<1x128xf32, #tpu.memory_space<vmem>>, %arg2: memref<1x128xf32, #tpu.memory_space<vmem>>, %arg3: memref<1x128xf32, #tpu.memory_space<vmem>>) attributes {dimension_semantics = [#tpu.dimension_semantics<arbitrary>], iteration_bounds = array<i64: 1>, scalar_prefetch = 0 : i64, scratch_operands = 0 : i64, tpu.core_type = #tpu.core_type<tc>, window_params = [{pipeline_mode = #tpu.pipeline_mode<synchronous>, transform_indices = @transform_0, window_bounds = array<i64: 1, 128>}, {pipeline_mode = #tpu.pipeline_mode<synchronous>, transform_indices = @transform_1, window_bounds = array<i64: 1, 128>}, {pipeline_mode = #tpu.pipeline_mode<synchronous>, transform_indices = @transform_2, window_bounds = array<i64: 1, 128>}]} {
    %c0 = arith.constant 0 : index
    %c0_0 = arith.constant 0 : index
    %0 = vector.load %arg1[%c0, %c0_0] : memref<1x128xf32, #tpu.memory_space<vmem>>, vector<1x128xf32>
    %c0_1 = arith.constant 0 : index
    %c0_2 = arith.constant 0 : index
    %1 = vector.load %arg2[%c0_1, %c0_2] : memref<1x128xf32, #tpu.memory_space<vmem>>, vector<1x128xf32>
    %2 = tpu.iota {dimensions = array<i32: 1>} : vector<1x128xi32>
    %c32_i32 = arith.constant 32 : i32
    %3 = vector.broadcast %c32_i32 : i32 to vector<1x128xi32>
    %4 = arith.cmpi slt, %2, %3 : vector<1x128xi32>
    %cst = arith.constant 0.000000e+00 : f32
    %5 = vector.broadcast %cst : f32 to vector<1x128xf32>
    %6 = arith.select %4, %0, %5 : vector<1x128xi1>, vector<1x128xf32>
    %cst_3 = arith.constant dense<0.000000e+00> : vector<1xf32>
    %7 = vector.multi_reduction <add>, %6, %cst_3 [1] : vector<1x128xf32> to vector<1xf32>
    %8 = vector.shape_cast %7 : vector<1xf32> to vector<1x1xf32>
    %cst_4 = arith.constant 1.000000e-10 : f32
    %9 = vector.broadcast %cst_4 : f32 to vector<1x128xf32>
    %10 = arith.addf %1, %9 : vector<1x128xf32>
    %11 = math.log %10 : vector<1x128xf32>
    %cst_5 = arith.constant 0.000000e+00 : f32
    %12 = vector.broadcast %cst_5 : f32 to vector<1x128xf32>
    %13 = arith.subf %12, %11 : vector<1x128xf32>
    %cst_6 = arith.constant 1.000000e-10 : f32
    %14 = vector.broadcast %cst_6 : f32 to vector<1x128xf32>
    %15 = arith.addf %13, %14 : vector<1x128xf32>
    %16 = math.log %15 : vector<1x128xf32>
    %cst_7 = arith.constant 0.000000e+00 : f32
    %17 = vector.broadcast %cst_7 : f32 to vector<1x128xf32>
    %18 = arith.subf %17, %16 : vector<1x128xf32>
    %cst_8 = arith.constant 1.000000e-10 : f32
    %19 = vector.broadcast %cst_8 : f32 to vector<1x128xf32>
    %20 = arith.addf %0, %19 : vector<1x128xf32>
    %21 = math.log %20 : vector<1x128xf32>
    %cst_9 = arith.constant 1.000000e-10 : f32
    %22 = vector.broadcast %cst_9 : f32 to vector<1x1xf32>
    %23 = arith.addf %8, %22 : vector<1x1xf32>
    %24 = math.log %23 : vector<1x1xf32>
    %25 = vector.broadcast %24 : vector<1x1xf32> to vector<1x128xf32>
    %26 = arith.subf %21, %25 : vector<1x128xf32>
    %27 = arith.addf %26, %18 : vector<1x128xf32>
    %cst_10 = arith.constant 1.000000e+00 : f32
    %28 = vector.broadcast %cst_10 : f32 to vector<1x128xf32>
    %29 = arith.mulf %27, %28 : vector<1x128xf32>
    %cst_11 = arith.constant -1.000000e+30 : f32
    %30 = vector.broadcast %cst_11 : f32 to vector<1x128xf32>
    %31 = arith.select %4, %29, %30 : vector<1x128xi1>, vector<1x128xf32>
    %cst_12 = arith.constant dense<0xFF800000> : vector<1xf32>
    %32 = vector.multi_reduction <maximumf>, %31, %cst_12 [1] : vector<1x128xf32> to vector<1xf32>
    %33 = vector.shape_cast %32 : vector<1xf32> to vector<1x1xf32>
    %34 = vector.broadcast %33 : vector<1x1xf32> to vector<1x128xf32>
    %35 = arith.subf %31, %34 : vector<1x128xf32>
    %36 = math.exp %35 : vector<1x128xf32>
    %cst_13 = arith.constant dense<0.000000e+00> : vector<1xf32>
    %37 = vector.multi_reduction <add>, %36, %cst_13 [1] : vector<1x128xf32> to vector<1xf32>
    %38 = vector.shape_cast %37 : vector<1xf32> to vector<1x1xf32>
    %39 = vector.broadcast %38 : vector<1x1xf32> to vector<1x128xf32>
    %40 = arith.divf %36, %39 : vector<1x128xf32>
    %c0_14 = arith.constant 0 : index
    %c0_15 = arith.constant 0 : index
    %41 = vector.load %arg3[%c0_14, %c0_15] : memref<1x128xf32, #tpu.memory_space<vmem>>, vector<1x128xf32>
    tpu.vector_store %arg3[%c0_14, %c0_15], %40 {strides = array<i32>} : memref<1x128xf32, #tpu.memory_space<vmem>>, vector<1x128xf32>,
    return
  }
  func.func @transform_0(%arg0: i32) -> (i32, i32) {
    %c0_i32 = arith.constant 0 : i32
    %c0_i32_0 = arith.constant 0 : i32
    %c0_i32_1 = arith.constant 0 : i32
    return %c0_i32, %c0_i32_0 : i32, i32
  }
  func.func @transform_1(%arg0: i32) -> (i32, i32) {
    %c0_i32 = arith.constant 0 : i32
    %c0_i32_0 = arith.constant 0 : i32
    %c0_i32_1 = arith.constant 0 : i32
    return %c0_i32, %c0_i32_0 : i32, i32
  }
  func.func @transform_2(%arg0: i32) -> (i32, i32) {
    %c0_i32 = arith.constant 0 : i32
    %c0_i32_0 = arith.constant 0 : i32
    %c0_i32_1 = arith.constant 0 : i32
    return %c0_i32, %c0_i32_0 : i32, i32
  }
}

module attributes {stable_mosaic.version = 11 : i64} {
  func.func @_colnorm_kernel(%arg0: i32, %arg1: i32, %arg2: memref<8x16xf32, #tpu.memory_space<vmem>>, %arg3: memref<16x128xf32, #tpu.memory_space<vmem>>, %arg4: memref<1x128xf32, #tpu.memory_space<vmem>>, %arg5: memref<1x128xf32, #tpu.memory_space<vmem>>) attributes {dimension_semantics = [#tpu.dimension_semantics<parallel>, #tpu.dimension_semantics<parallel>], iteration_bounds = array<i64: 1, 1>, scalar_prefetch = 0 : i64, scratch_operands = 0 : i64, tpu.core_type = #tpu.core_type<tc>, window_params = [{transform_indices = @transform_0, window_bounds = array<i64: 8, 16>}, {transform_indices = @transform_1, window_bounds = array<i64: 16, 128>}, {transform_indices = @transform_2, window_bounds = array<i64: 1, 128>}, {transform_indices = @transform_3, window_bounds = array<i64: 1, 128>}]} {
    %c0 = arith.constant 0 : index
    %c0_0 = arith.constant 0 : index
    %0 = vector.load %arg2[%c0, %c0_0] : memref<8x16xf32, #tpu.memory_space<vmem>>, vector<8x16xf32>
    %c0_1 = arith.constant 0 : index
    %c0_2 = arith.constant 0 : index
    %1 = vector.load %arg3[%c0_1, %c0_2] : memref<16x128xf32, #tpu.memory_space<vmem>>, vector<16x128xf32>
    %cst = arith.constant dense<0.000000e+00> : vector<8x128xf32>
    %2 = tpu.matmul %0, %1, %cst {dimension_numbers = #tpu.dot_dimension_numbers<[1], [0], [0], [1], [0, 0, 1, 1], [], []>} : vector<8x16xf32>, vector<16x128xf32>, vector<8x128xf32> -> vector<8x128xf32>
    %3 = arith.mulf %2, %2 : vector<8x128xf32>
    %cst_3 = arith.constant dense<0.000000e+00> : vector<128xf32>
    %4 = vector.multi_reduction <add>, %3, %cst_3 [0] : vector<8x128xf32> to vector<128xf32>
    %5 = vector.shape_cast %4 : vector<128xf32> to vector<1x128xf32>
    %c0_4 = arith.constant 0 : index
    %c0_5 = arith.constant 0 : index
    %6 = vector.load %arg4[%c0_4, %c0_5] : memref<1x128xf32, #tpu.memory_space<vmem>>, vector<1x128xf32>
    %7 = arith.subf %6, %5 : vector<1x128xf32>
    %cst_6 = arith.constant 0.000000e+00 : f32
    %8 = vector.broadcast %cst_6 : f32 to vector<1x128xf32>
    %9 = arith.maximumf %7, %8 : vector<1x128xf32>
    %c0_7 = arith.constant 0 : index
    %c0_8 = arith.constant 0 : index
    %10 = vector.load %arg5[%c0_7, %c0_8] : memref<1x128xf32, #tpu.memory_space<vmem>>, vector<1x128xf32>
    tpu.vector_store %arg5[%c0_7, %c0_8], %9 {strides = array<i32>} : memref<1x128xf32, #tpu.memory_space<vmem>>, vector<1x128xf32>,
    return
  }
  func.func @transform_0(%arg0: i32, %arg1: i32) -> (i32, i32) {
    %c0_i32 = arith.constant 0 : i32
    %c0_i32_0 = arith.constant 0 : i32
    return %arg1, %c0_i32 : i32, i32
  }
  func.func @transform_1(%arg0: i32, %arg1: i32) -> (i32, i32) {
    %c0_i32 = arith.constant 0 : i32
    %c0_i32_0 = arith.constant 0 : i32
    return %c0_i32, %arg0 : i32, i32
  }
  func.func @transform_2(%arg0: i32, %arg1: i32) -> (i32, i32) {
    %c0_i32 = arith.constant 0 : i32
    %c0_i32_0 = arith.constant 0 : i32
    return %c0_i32, %arg0 : i32, i32
  }
  func.func @transform_3(%arg0: i32, %arg1: i32) -> (i32, i32) {
    %c0_i32 = arith.constant 0 : i32
    return %arg1, %arg0 : i32, i32
  }
}

</mosaic_0001>

<bundles_post_ra>
// kernel: step.3
= control target key start
LH: loop header
LB: loop body
LE: loop exit
PB: predicated region body
PF: predicated region fallthrough
CT: control target
= control target key end

     0   :  { %v13_v0 = vlaneseq  ;;  %vm17_vm0 = vcmask 1040384   ;;  %s95_s0 = inlined_call_operand.vmem [shape: f32[1,128], index: 0, kind: input, shape index: {}]   ;;  %s96_s1 = inlined_call_operand.vmem [shape: f32[1,128], index: 1, kind: input, shape index: {}]   ;;  %s97_s2 = inlined_call_operand.vmem [shape: f32[1,128], index: 2, kind: output, shape index: {}]  }
   0x1   :  { %v11_v1 = vld [vmem:[%s95_s0] sm:$0x1] }
   0x2   :  { %v14_v2 = vand.u32 127, %v13_v0  ;;  %v12_v5 = vld [vmem:[%s96_s1] sm:$0x1]  ;;  %v29_v11 = vadd.f32 1e-10, %v11_v1 }
   0x3   :  { %v21_v6 = vadd.f32 1e-10, %v12_v5 }
   0x4   :  { %vm15_vm1 = vcmp.lt.s32.totalorder %v14_v2, 32 }
   0x5   :  { %v16_v3 = vsel %vm15_vm1, %v11_v1, 0.0  ;;  %54 = vlog2.f32 %v21_v6 }
   0x6   :  { %v18_v4 = vsel %vm17_vm0, %v16_v3, 0.0 }
   0x7   :  { %19 = vadd.xlane.f32.xlu0 %v18_v4 }
   0xf   :  { %v55_v7 = vpop.eup %54 }
  0x10   :  { %v23_v8 = vmul.f32 0.6931472, %v55_v7 }
  0x12   :  { %v24_v9 = vsub.f32 0.0, %v23_v8 }
  0x14   :  { %v25_v10 = vadd.f32 1e-10, %v24_v9 }
  0x16   :  { %56 = vlog2.f32 %v25_v10 }
  0x17   :  { %58 = vlog2.f32 %v29_v11 }
  0x20   :  { %v57_v14 = vpop.eup %56 }
  0x21   :  { %v59_v15 = vpop.eup %58  ;;  %v27_v16 = vmul.f32 0.6931472, %v57_v14 }
  0x22   :  { %v31_v17 = vmul.f32 0.6931472, %v59_v15 }
  0x23   :  { %v28_v20 = vsub.f32 0.0, %v27_v16 }
  0x94   :  { %v20_v12 = vpop.xlane.xlu0 %19 }
  0x95   :  { %v32_v13 = vadd.f32 1e-10, %v20_v12 }
  0x97   :  { %60 = vlog2.f32 %v32_v13 }
  0xa1   :  { %v61_v18 = vpop.eup %60 }
  0xa2   :  { %v34_v19 = vmul.f32 0.6931472, %v61_v18 }
  0xa4   :  { %v35_v21 = vsub.f32 %v31_v17, %v34_v19 }
  0xa6   :  { %v36_v22 = vadd.f32 %v35_v21, %v28_v20 }
  0xa8   :  { %v37_v23 = vsel %vm15_vm1, %v36_v22, -1e+30 }
  0xa9   :  { %v38_v24 = vsel %vm17_vm0, %v37_v23, -inf }
  0xaa   :  { %39 = vmax.xlane.f32.xlu0 %v38_v24 }
 0x137   :  { %v40_v25 = vpop.xlane.xlu0 %39 }
 0x138   :  { %v41_v26 = vsub.f32 %v37_v23, %v40_v25 }
 0x13a   :  { %v42_v27 = vmul.f32 1.442695, %v41_v26 }
 0x13c   :  { %62 = vpow2.f32 %v42_v27 }
 0x146   :  { %v63_v28 = vpop.eup %62 }
 0x147   :  { %v44_v29 = vsel %vm17_vm0, %v63_v28, 0.0 }
 0x148   :  { %45 = vadd.xlane.f32.xlu1 %v44_v29 }
 0x1d5   :  { %v46_v30 = vpop.xlane.xlu1 %45 }
 0x1d6   :  { %64 = vrcp.f32 %v46_v30 }
 0x1e0   :  { %v65_v31 = vpop.eup %64 }
 0x1e1   :  { %v48_v32 = vmul.f32 %v65_v31, %v63_v28 }
 0x1e3   :  { %49 = vst [vmem:[%s97_s2] sm:$0x1] %v48_v32 }

// kernel: step.2
= control target key start
LH: loop header
LB: loop body
LE: loop exit
PB: predicated region body
PF: predicated region fallthrough
CT: control target
= control target key end

     0   :  { %8 = vsyncpa [#allocation3], 0  ;;  %s267_s0 = inlined_call_operand.hbm [shape: f32[8,16], index: 0, kind: input, shape index: {}]   ;;  %s268_s1 = inlined_call_operand.hbm [shape: f32[16,128], index: 1, kind: input, shape index: {}]   ;;  %s269_s2 = inlined_call_operand.vmem [shape: f32[1,128], index: 2, kind: input, shape index: {}]   ;;  %s270_s3 = inlined_call_operand.vmem [shape: f32[1,128], index: 3, kind: output, shape index: {}]  }
   0x1   :  { %9 = vsyncpa [#allocation5], 0  ;;  %s203_s12 = smov [#allocation2]   ;;  %s204_s14 = smov [#allocation4]  }
   0x2   :  { %s16_s13 = sshll.u32 %s203_s12, 4  ;;  %s25_s15 = sshll.u32 %s204_s14, 4  ;;  %s17_s13 = int_to_ptr.vmem [resolvable:$true] %s16_s13  ;;  %s230_s15 = int_to_ptr.vmem [resolvable:$true] %s25_s15 }
   0x3   :  { %s155_s18 = scalar_lea.hbm %s267_s0, 128 }
   0x4   :  { %p156_p0 = scmp.ne.s32.totalorder %s267_s0, %s155_s18  ;;  %p159_p1 = scmp.lt.u32.totalorder %s155_s18, %s267_s0 }
   0x6   :  { %p161_p2 = pnand %p159_p1, %p156_p0 }
   0x8   :  { %164 = shalt.err (!%p161_p2)
}
   0x9   :  { %s165_s23 = scalar_lea.vmem %s17_s13, 128  ;;  %p170_p4 = scmp.lt.s32.totalorder %s17_s13, %s17_s13 }
   0xa   :  { %p166_p3 = scmp.ne.s32.totalorder %s17_s13, %s165_s23  ;;  %p171_p5 = scmp.lt.s32.totalorder %s165_s23, %s165_s23 }
   0xc   :  { %p172_p6 = por %p171_p5, %p170_p4 }
   0xe   :  { %p173_p7 = pnand %p172_p6, %p166_p3 }
  0x10   :  { %176 = shalt.err (!%p173_p7)
}
  0x11   :  { %19 = dma.hbm_to_vmem [thread:$0]  %s267_s0, 128, %s17_s13, [#allocation3]  }
  0x12   :  { %s177_s28 = scalar_lea.hbm %s268_s1, 256 }
  0x13   :  { %p178_p8 = scmp.ne.s32.totalorder %s268_s1, %s177_s28  ;;  %p181_p9 = scmp.lt.u32.totalorder %s177_s28, %s268_s1 }
  0x15   :  { %p183_p10 = pnand %p181_p9, %p178_p8 }
  0x17   :  { %186 = shalt.err (!%p183_p10)
}
  0x18   :  { %s187_s6 = scalar_lea.vmem %s230_s15, 256  ;;  %p192_p12 = scmp.lt.s32.totalorder %s230_s15, %s230_s15 }
  0x19   :  { %p188_p11 = scmp.ne.s32.totalorder %s230_s15, %s187_s6  ;;  %p193_p13 = scmp.lt.s32.totalorder %s187_s6, %s187_s6 }
  0x1b   :  { %p194_p0 = por %p193_p13, %p192_p12 }
  0x1d   :  { %p195_p1 = pnand %p194_p0, %p188_p11 }
  0x1f   :  { %198 = shalt.err (!%p195_p1)
}
  0x20   :  { %s205_s0 = smov 128   ;;  %s206_s7 = smov 8  }
  0x21   :  { %31 = dma.hbm_to_vmem [thread:$0]  %s268_s1, 256, %s230_s15, [#allocation5], %s205_s0, %s205_s0, %s206_s7  }
  0x22   :  { %199 = dma.done.wait [#allocation3], 128  }
  0x23   :  { %200 = vsyncadd [#allocation3], 4294967168 }
  0x24   :  { %201 = dma.done.wait [#allocation5], 256  }
  0x25   :  { %202 = vsyncadd [#allocation5], 4294967040  ;;  %v207_v0 = vmov 0.0|0.0   ;;  %vm208_vm0 = vmmov 0   ;;  %v209_v1 = vmov 0.0   ;;  %v41_v2 = vld [vmem:[#allocation4] sm:$0xff] }
  0x26   :  { %145 = vmatprep.subr.bf16.mxu0 %v207_v0  ;;  %142 = vmatprep.mubr.msk.f32.mxu0 %vm208_vm0, %v209_v1  ;;  %v42_v3 = vld [vmem:[#allocation4 + $0x8] sm:$0xff]  ;;  %v40_v5 = vld [vmem:[#allocation2] sm:$0xff]  ;;  %vm43_vm1 = vcmask 130048  }
  0x27   :  { %v146_v4 = vpack.c.bf16 %v42_v3, %v41_v2  ;;  %v124_v14 = vld [vmem:[%s269_s2] sm:$0x1] }
  0x29   :  { %147 = vmatpush3.bf16.msra.mxu0 %v146_v4 }
  0x2c   :  { %143 = vmatmul.mubr.msk.f32.vlgmr.msra.gmra.mrb[0].mxu0 %vm43_vm1, %v40_v5 }
  0xff   :  { %v113_v6 = vpop.f32.mrb[0].mxu0 }
 0x100   :  { %v117_v7 = vmul.f32 %v113_v6, %v113_v6  ;;  %v144_v8 = vpop.f32.mrb[1].mxu0 }
 0x102   :  { %v118_v9 = vrot.slane %v117_v7, 4 }
 0x104   :  { %v119_v10 = vadd.f32 %v118_v9, %v117_v7 }
 0x106   :  { %v120_v11 = vrot.slane %v119_v10, 2 }
 0x108   :  { %v121_v12 = vadd.f32 %v120_v11, %v119_v10 }
 0x10a   :  { %v122_v13 = vrot.slane %v121_v12, 1 }
 0x10c   :  { %v123_v15 = vadd.f32 %v122_v13, %v121_v12 }
 0x10e   :  { %v125_v16 = vsub.f32 %v124_v14, %v123_v15 }
 0x110   :  { %v126_v17 = vmax.f32 %v125_v16, 0.0 }
 0x112   :  { %127 = vst [vmem:[%s270_s3] sm:$0x1] %v126_v17 }
 0x113   :  { %132 = vsyncpa [#allocation3], 1 }
 0x114   :  { %133 = vsyncpa [#allocation5], 1 }

</bundles_post_ra>
